<compile_context>
chip_gen: v5e
topology: v5e:2x2
jax: 0.10.0
libtpu: 0.0.40
codegen_flags: <defaults>
</compile_context>

<pallas_src>
import functools

import jax
import jax.numpy as jnp
from jax.experimental import pallas as pl
from jax.experimental.pallas import tpu as pltpu


# ----------------------------- small helpers --------------------------------

_VMEM_LIMIT = None


def _vmem_limit():
    """Per-generation scoped-VMEM limit: ~3/4 of physical, capped at 96 MiB."""
    global _VMEM_LIMIT
    if _VMEM_LIMIT is None:
        try:
            cap = int(pltpu.get_tpu_info().vmem_capacity_bytes)
            _VMEM_LIMIT = min(96 * 1024 * 1024, (cap * 3) // 4)
        except Exception:  # conservative fallback, safe on v7x (64 MiB/TC)
            _VMEM_LIMIT = 48 * 1024 * 1024
    return _VMEM_LIMIT


def _mosaic_params(dims):
    return pltpu.CompilerParams(dimension_semantics=dims,
                                vmem_limit_bytes=_vmem_limit())


def _pick_tm(M, K):
    """M-tile from a VMEM budget (double-buffered bf16 x tile <= budget/4)."""
    budget = _vmem_limit() // 4
    cap = 512
    while cap > 64 and (2 * cap * K * 2) > budget:
        cap //= 2
    return M if M <= cap else cap


# -------------------- fused matmul (1x1 conv / im2col conv) -----------------

def _mm_kernel(*refs, relu, n_add, n_res):
    # refs: x, [x_add...], w, bias, [residual...], out
    idx = 0
    x = refs[idx][...]
    idx += 1
    for _ in range(n_add):            # fused CBNet connect add (prologue)
        x = x + refs[idx][...]
        idx += 1
    w = refs[idx][...]
    idx += 1
    b = refs[idx][...]
    idx += 1
    acc = jnp.dot(x, w, preferred_element_type=jnp.float32) + b
    for _ in range(n_res):            # fused bottleneck residual (epilogue)
        acc = acc + refs[idx][...].astype(jnp.float32)
        idx += 1
    if relu:
        acc = jnp.maximum(acc, 0.0)
    o_ref = refs[idx]
    o_ref[...] = acc.astype(o_ref.dtype)


def matmul_bias_act(x, w, bias, relu, x_add=None, residuals=()):
    """y = act((x [+x_add]) @ w + bias [+ residuals]).  x:(M,K) bf16, w:(K,N) bf16."""
    M, K = x.shape
    N = w.shape[1]
    TN = N if N <= 512 else 512
    TM = _pick_tm(M, K)
    # Keep >= 2 grid steps along a parallel axis when cheaply possible so both
    # v7x TensorCores get work even for the late low-resolution layers.
    if pl.cdiv(M, TM) * pl.cdiv(N, TN) == 1:
        if N >= 256 and N % 256 == 0:
            TN = N // 2
        elif M >= 16 and M % 16 == 0:
            TM = M // 2
    # Grid: weight tile (j) outer, M tile (i) inner -> the (K,TN) weight block
    # stays VMEM-resident across the whole M sweep (fetched once per j).
    grid = (pl.cdiv(N, TN), pl.cdiv(M, TM))

    in_specs = [pl.BlockSpec((TM, K), lambda j, i: (i, 0))]
    args = [x]
    if x_add is not None:
        in_specs.append(pl.BlockSpec((TM, K), lambda j, i: (i, 0)))
        args.append(x_add)
    in_specs += [pl.BlockSpec((K, TN), lambda j, i: (0, j)),
                 pl.BlockSpec((1, TN), lambda j, i: (0, j))]
    args += [w, bias]
    for r in residuals:
        in_specs.append(pl.BlockSpec((TM, TN), lambda j, i: (i, j)))
        args.append(r)

    return pl.pallas_call(
        functools.partial(_mm_kernel, relu=relu,
                          n_add=0 if x_add is None else 1,
                          n_res=len(residuals)),
        out_shape=jax.ShapeDtypeStruct((M, N), jnp.bfloat16),
        grid=grid,
        in_specs=in_specs,
        out_specs=pl.BlockSpec((TM, TN), lambda j, i: (i, j)),
        compiler_params=_mosaic_params(("parallel", "parallel")),
    )(*args)


# ------------------ fused direct 3x3 conv, stride 1 (no im2col) -------------

def _conv3x3_s1_kernel(x_ref, w_ref, b_ref, o_ref, *, Wp, Ho, Wo, C, relu):
    # x_ref: (1, Hp*Wp, C) flattened padded image; w_ref: (9*C, Co); b:(1,Co)
    # o_ref: (1, Ho, Wo, Co).
    # Tap (kh,kw) is a shifted contiguous slab of the flattened input; its
    # contribution to output (h,w) lands at accumulator row h*Wp+w for every
    # tap, so all 9 dots share one f32 accumulator (rows w in [Wo,Wp) are junk
    # and are dropped at store time).
    L = Ho * Wp
    acc = None
    for kh in range(3):
        for kw in range(3):
            off = kh * Wp + kw
            t = kh * 3 + kw
            xt = x_ref[0, off:off + L, :]                 # (L, C) bf16
            wt = w_ref[t * C:(t + 1) * C, :]              # (C, Co) bf16
            d = jnp.dot(xt, wt, preferred_element_type=jnp.float32)
            acc = d if acc is None else acc + d
    y = acc + b_ref[...]
    if relu:
        y = jnp.maximum(y, 0.0)
    y = y.astype(o_ref.dtype)
    for h in range(Ho):                                    # drop junk columns
        o_ref[0, h, :, :] = y[h * Wp:h * Wp + Wo, :]


def conv3x3_s1(x, p, relu=True):
    """Fused 3x3/stride-1/pad-1 conv + folded BN + ReLU, NHWC bf16, no im2col."""
    N, H, W, C = x.shape
    Co = p['w'].shape[1]
    Wp = W + 2
    Hp = H + 3  # pad top=1, bottom=2: the extra row keeps every tap's
                # flattened slab of length Ho*Wp inside the array.
    xp = jnp.pad(x, ((0, 0), (1, 2), (1, 1), (0, 0)))
    xf = xp.reshape(N, Hp * Wp, C)
    # TODO(synk): for detection-scale inputs, tile the output rows and stream
    # the halo'd slab with a manual DMA (memory_space=pl.ANY) instead of
    # keeping the full per-image slab resident; also tile Co when > 512.
    return pl.pallas_call(
        functools.partial(_conv3x3_s1_kernel, Wp=Wp, Ho=H, Wo=W, C=C, relu=relu),
        out_shape=jax.ShapeDtypeStruct((N, H, W, Co), jnp.bfloat16),
        grid=(N,),
        in_specs=[pl.BlockSpec((1, Hp * Wp, C), lambda n: (n, 0, 0)),
                  pl.BlockSpec((9 * C, Co), lambda n: (0, 0)),
                  pl.BlockSpec((1, Co), lambda n: (0, 0))],
        out_specs=pl.BlockSpec((1, H, W, Co), lambda n: (n, 0, 0, 0)),
        compiler_params=_mosaic_params(("parallel",)),
    )(xf, p['w'], p['bias'])


# -------------------------- maxpool 3x3 / stride 2 --------------------------

def _maxpool_kernel(p00, p01, p10, p11, o_ref, *, Ho, Wo):
    phases = (p00, p01, p10, p11)
    acc = None
    for kh in range(3):
        for kw in range(3):
            pr = phases[(kh % 2) * 2 + (kw % 2)]
            r0, c0 = kh // 2, kw // 2
            xt = pr[0, r0:r0 + Ho, c0:c0 + Wo, :]
            acc = xt if acc is None else jnp.maximum(acc, xt)
    o_ref[0, :, :, :] = acc


def maxpool_3x3_s2(x):
    """MaxPool2d(3, stride=2, padding=1) on NHWC bf16 via 4 stride-2 phases."""
    N, H, W, C = x.shape
    # finfo.min instead of -inf: every 3x3/s2/p1 window has >=1 real element,
    # and a finite pad value can never leak a non-finite output.
    pad_val = jnp.finfo(jnp.bfloat16).min
    xp = jnp.pad(x, ((0, 0), (1, 1), (1, 1), (0, 0)), constant_values=pad_val)
    Ho = (H + 2 - 3) // 2 + 1
    Wo = (W + 2 - 3) // 2 + 1
    # 4 stride-2 phases (~1x copy total) instead of 9 output-sized tap copies.
    phases = [xp[:, a::2, b::2, :] for a in (0, 1) for b in (0, 1)]
    in_specs = [pl.BlockSpec((1,) + p.shape[1:], lambda n: (n, 0, 0, 0))
                for p in phases]
    return pl.pallas_call(
        functools.partial(_maxpool_kernel, Ho=Ho, Wo=Wo),
        out_shape=jax.ShapeDtypeStruct((N, Ho, Wo, C), jnp.bfloat16),
        grid=(N,),
        in_specs=in_specs,
        out_specs=pl.BlockSpec((1, Ho, Wo, C), lambda n: (n, 0, 0, 0)),
        compiler_params=_mosaic_params(("parallel",)),
    )(*phases)


# ------------------------------ JAX glue ops --------------------------------

def conv1x1(x, p, stride=1, relu=False, x_add=None, residuals=()):
    """1x1 conv + folded BN (+ fused prologue add / residuals / ReLU). NHWC."""
    if stride != 1:
        x = x[:, ::stride, ::stride, :]
        if x_add is not None:
            x_add = x_add[:, ::stride, ::stride, :]
    N, Ho, Wo, C = x.shape
    M = N * Ho * Wo
    mat = x.reshape(M, C)
    add_mat = None if x_add is None else x_add.reshape(M, C)
    res_mats = tuple(r.reshape(M, r.shape[-1]) for r in residuals)
    y = matmul_bias_act(mat, p['w'], p['bias'], relu,
                        x_add=add_mat, residuals=res_mats)
    return y.reshape(N, Ho, Wo, -1)


def conv_im2col(x, p, ksize, stride, pad, relu):
    """Generic conv via im2col + fused Pallas matmul (stem 7x7, stride-2 3x3).
    TODO(synk): stride-2 3x3 convs could also use a direct fused kernel via a
    4-phase (space-to-depth) decomposition; left as im2col here (their output
    maps are 4x smaller so the blow-up is 2.25x, not 9x)."""
    N, H, W, C = x.shape
    xp = jnp.pad(x, ((0, 0), (pad, pad), (pad, pad), (0, 0)))
    Ho = (H + 2 * pad - ksize) // stride + 1
    Wo = (W + 2 * pad - ksize) // stride + 1
    taps = []
    for kh in range(ksize):
        for kw in range(ksize):
            taps.append(xp[:, kh:kh + stride * (Ho - 1) + 1:stride,
                           kw:kw + stride * (Wo - 1) + 1:stride, :])
    mat = jnp.concatenate(taps, axis=-1).reshape(N * Ho * Wo, ksize * ksize * C)
    y = matmul_bias_act(mat, p['w'], p['bias'], relu)
    return y.reshape(N, Ho, Wo, -1)


def upsample_nearest(x, out_hw):
    """nn.UpsamplingNearest2d(size=out_hw) on NHWC (single fused broadcast)."""
    N, H, W, C = x.shape
    Ho, Wo = out_hw
    if (Ho, Wo) == (H, W):
        return x
    if Ho % H == 0 and Wo % W == 0:
        return jnp.repeat(jnp.repeat(x, Ho // H, axis=1), Wo // W, axis=2)
    hi = (jnp.arange(Ho) * H) // Ho
    wi = (jnp.arange(Wo) * W) // Wo
    return x[:, hi][:, :, wi]


# --------------------------- parameter construction -------------------------

STAGE_PLANES = [64, 128, 256, 512]
STAGE_OUT = [256, 512, 1024, 2048]
STAGE_STRIDES = [1, 2, 2, 2]
BLOCKS_PER_STAGE = 1  # synthetic small config; real depth comes from backbone_args
LEFT_OUT = [256, 512, 1024, 2048]
RIGHT_IN = [64, 256, 512, 1024]


def init_conv_bn(key, k_in, c_out):
    k1, k2, k3, k4, k5 = jax.random.split(key, 5)
    w = jax.random.normal(k1, (k_in, c_out), jnp.float32) * (2.0 / k_in) ** 0.5 * 0.5
    gamma = 1.0 + 0.1 * jax.random.normal(k2, (c_out,), jnp.float32)
    beta = 0.1 * jax.random.normal(k3, (c_out,), jnp.float32)
    mean = 0.1 * jax.random.normal(k4, (c_out,), jnp.float32)
    var = 1.0 + 0.1 * jax.random.uniform(k5, (c_out,), jnp.float32)
    eps = 1e-5
    scale = gamma / jnp.sqrt(var + eps)
    bias = beta - mean * scale
    # Fold BN scale into the conv weights offline; pre-cast to bf16 for the MXU.
    w_folded = (w * scale[None, :]).astype(jnp.bfloat16)
    return {'w': w_folded, 'bias': bias.reshape(1, -1).astype(jnp.float32)}


def init_backbone(key):
    keys = iter(jax.random.split(key, 64))
    p = {'stem_conv1': init_conv_bn(next(keys), 7 * 7 * 3, 64), 'layers': []}
    in_ch = 64
    for s in range(4):
        blocks = []
        for b in range(BLOCKS_PER_STAGE):
            stride = STAGE_STRIDES[s] if b == 0 else 1
            planes = STAGE_PLANES[s]
            bp = {
                'conv1': init_conv_bn(next(keys), in_ch, planes),
                'conv2': init_conv_bn(next(keys), 9 * planes, planes),
                'conv3': init_conv_bn(next(keys), planes, STAGE_OUT[s]),
            }
            if stride != 1 or in_ch != STAGE_OUT[s]:
                bp['downsample'] = init_conv_bn(next(keys), in_ch, STAGE_OUT[s])
            blocks.append(bp)
            in_ch = STAGE_OUT[s]
        p['layers'].append(blocks)
    return p


def init_cbnet(key, num_repeat=2):
    kb, kc = jax.random.split(key)
    backbones = [init_backbone(k) for k in jax.random.split(kb, num_repeat)]
    connects = [init_conv_bn(k, LEFT_OUT[i], RIGHT_IN[i])
                for i, k in enumerate(jax.random.split(kc, 4))]
    return {'backbones': backbones, 'connect': connects}


# ------------------------------- forward pass -------------------------------

def bottleneck(x, bp, stride, x2=None):
    # x2 (CBNet connect output) is added to x inside the conv1 / downsample
    # matmul prologues instead of a standalone elementwise kernel.
    out = conv1x1(x, bp['conv1'], 1, relu=True, x_add=x2)
    if stride == 1:
        out = conv3x3_s1(out, bp['conv2'], relu=True)       # fused direct conv
    else:
        out = conv_im2col(out, bp['conv2'], 3, stride, 1, relu=True)
    if 'downsample' in bp:
        residuals = (conv1x1(x, bp['downsample'], stride, relu=False, x_add=x2),)
    else:
        residuals = (x,) if x2 is None else (x, x2)
    # conv3 + BN + residual add(s) + ReLU fused into one matmul epilogue.
    return conv1x1(out, bp['conv3'], 1, relu=True, residuals=residuals)


def run_layer(x, blocks, stride, x2=None):
    for b, bp in enumerate(blocks):
        x = bottleneck(x, bp, stride if b == 0 else 1,
                       x2=x2 if b == 0 else None)
    return x


def stem(x, bb):
    # TODO(synk): the 7x7/stride-2 stem stays on im2col (C_in=3 -> K=147 is
    # actually MXU-friendlier than a 3-lane direct conv).
    y = conv_im2col(x, bb['stem_conv1'], 7, 2, 3, relu=True)
    return maxpool_3x3_s2(y)


def cbnet_forward(x_nchw, params, use_act=True):
    # TODO(synk): only backbone_type='ResNet' path is implemented
    # (Res2Net / ResNet_VD stems differ; structure is otherwise identical).
    x = jnp.transpose(x_nchw, (0, 2, 3, 1)).astype(jnp.bfloat16)  # NCHW -> NHWC

    bb = params['backbones'][0]
    res = stem(x, bb)
    endpoints = []
    for i in range(4):
        res = run_layer(res, bb['layers'][i], STAGE_STRIDES[i])
        endpoints.append(res)

    for bb in params['backbones'][1:]:
        res = stem(x, bb)
        for i in range(4):
            cp = params['connect'][i]
            connect_out = conv1x1(endpoints[i], cp, 1, relu=use_act)
            connect_out = upsample_nearest(connect_out,
                                           (res.shape[1], res.shape[2]))
            # "connect_out + res" is fused into the first block of the layer.
            res = run_layer(res, bb['layers'][i], STAGE_STRIDES[i],
                            x2=connect_out)
            endpoints[i] = res

    # out_indices = (0, 1, 2, 3); back to NCHW, f32 interface like PyTorch.
    return tuple(jnp.transpose(e, (0, 3, 1, 2)).astype(jnp.float32)
                 for e in endpoints)


# ----------------------------------- main ------------------------------------

if __name__ == "__main__":
    key = jax.random.PRNGKey(0)
    k_param, k_x, k_t = jax.random.split(key, 3)
    params = init_cbnet(k_param, num_repeat=2)
    x = jax.random.normal(k_x, (2, 3, 16, 16), jnp.float32)  # NCHW like PyTorch

    # --- self-check the two new fused kernels against XLA references --------
    xt = jax.random.normal(k_t, (2, 4, 4, 64), jnp.float32).astype(jnp.bfloat16)
    pt = init_conv_bn(jax.random.PRNGKey(7), 9 * 64, 64)
    got = conv3x3_s1(xt, pt, relu=True)
    w_hwio = pt['w'].reshape(3, 3, 64, 64).astype(jnp.float32)
    ref = jax.lax.conv_general_dilated(
        xt.astype(jnp.float32), w_hwio, (1, 1), ((1, 1), (1, 1)),
        dimension_numbers=('NHWC', 'HWIO', 'NHWC'))
    ref = jnp.maximum(ref + pt['bias'].reshape(1, 1, 1, -1), 0.0)
    assert jnp.allclose(got.astype(jnp.float32), ref, atol=1e-1, rtol=5e-2), \
        "fused conv3x3 mismatch"

    mp_got = maxpool_3x3_s2(xt)
    mp_ref = jax.lax.reduce_window(
        xt.astype(jnp.float32), -jnp.inf, jax.lax.max,
        (1, 3, 3, 1), (1, 2, 2, 1), ((0, 0), (1, 1), (1, 1), (0, 0)))
    assert jnp.allclose(mp_got.astype(jnp.float32), mp_ref, atol=1e-2), \
        "fused maxpool mismatch"

    # --------------------------- full forward -------------------------------
    fwd = jax.jit(lambda xx, pp: cbnet_forward(xx, pp, use_act=True))
    outs = jax.block_until_ready(fwd(x, params))

    expected = [(2, 256, 4, 4), (2, 512, 2, 2), (2, 1024, 1, 1), (2, 2048, 1, 1)]
    assert len(outs) == 4
    for o, shp in zip(outs, expected):
        assert o.shape == shp, (o.shape, shp)
        assert bool(jnp.all(jnp.isfinite(o)))
    print("KERNEL_OK")
</pallas_src>

<mosaic_0001>
module attributes {stable_mosaic.version = 11 : i64} {
  func.func @_conv3x3_s1_kernel(%arg0: i32, %arg1: memref<1x42x64xbf16, #tpu.memory_space<vmem>>, %arg2: memref<576x64xbf16, #tpu.memory_space<vmem>>, %arg3: memref<1x64xf32, #tpu.memory_space<vmem>>, %arg4: memref<1x4x4x64xbf16, #tpu.memory_space<vmem>>) attributes {dimension_semantics = [#tpu.dimension_semantics<parallel>], iteration_bounds = array<i64: 2>, scalar_prefetch = 0 : i64, scratch_operands = 0 : i64, tpu.core_type = #tpu.core_type<tc>, window_params = [{transform_indices = @transform_0, window_bounds = array<i64: 1, 42, 64>}, {pipeline_mode = #tpu.pipeline_mode<synchronous>, transform_indices = @transform_1, window_bounds = array<i64: 576, 64>}, {pipeline_mode = #tpu.pipeline_mode<synchronous>, transform_indices = @transform_2, window_bounds = array<i64: 1, 64>}, {transform_indices = @transform_3, window_bounds = array<i64: 1, 4, 4, 64>}]} {
    %c0 = arith.constant 0 : index
    %c0_0 = arith.constant 0 : index
    %c0_1 = arith.constant 0 : index
    %0 = vector.load %arg1[%c0, %c0_0, %c0_1] : memref<1x42x64xbf16, #tpu.memory_space<vmem>>, vector<1x24x64xbf16>
    %1 = vector.shape_cast %0 : vector<1x24x64xbf16> to vector<24x64xbf16>
    %c0_2 = arith.constant 0 : index
    %c0_3 = arith.constant 0 : index
    %2 = vector.load %arg2[%c0_2, %c0_3] : memref<576x64xbf16, #tpu.memory_space<vmem>>, vector<64x64xbf16>
    %cst = arith.constant dense<0.000000e+00> : vector<24x64xf32>
    %3 = tpu.matmul %1, %2, %cst {dimension_numbers = #tpu.dot_dimension_numbers<[1], [0], [0], [1], [0, 0, 1, 1], [], []>} : vector<24x64xbf16>, vector<64x64xbf16>, vector<24x64xf32> -> vector<24x64xf32>
    %c0_4 = arith.constant 0 : index
    %c1 = arith.constant 1 : index
    %c0_5 = arith.constant 0 : index
    %4 = vector.load %arg1[%c0_4, %c1, %c0_5] : memref<1x42x64xbf16, #tpu.memory_space<vmem>>, vector<1x24x64xbf16>
    %5 = vector.shape_cast %4 : vector<1x24x64xbf16> to vector<24x64xbf16>
    %c64 = arith.constant 64 : index
    %c0_6 = arith.constant 0 : index
    %6 = vector.load %arg2[%c64, %c0_6] : memref<576x64xbf16, #tpu.memory_space<vmem>>, vector<64x64xbf16>
    %cst_7 = arith.constant dense<0.000000e+00> : vector<24x64xf32>
    %7 = tpu.matmul %5, %6, %cst_7 {dimension_numbers = #tpu.dot_dimension_numbers<[1], [0], [0], [1], [0, 0, 1, 1], [], []>} : vector<24x64xbf16>, vector<64x64xbf16>, vector<24x64xf32> -> vector<24x64xf32>
    %8 = arith.addf %3, %7 : vector<24x64xf32>
    %c0_8 = arith.constant 0 : index
    %c2 = arith.constant 2 : index
    %c0_9 = arith.constant 0 : index
    %9 = vector.load %arg1[%c0_8, %c2, %c0_9] : memref<1x42x64xbf16, #tpu.memory_space<vmem>>, vector<1x24x64xbf16>
    %10 = vector.shape_cast %9 : vector<1x24x64xbf16> to vector<24x64xbf16>
    %c128 = arith.constant 128 : index
    %c0_10 = arith.constant 0 : index
    %11 = vector.load %arg2[%c128, %c0_10] : memref<576x64xbf16, #tpu.memory_space<vmem>>, vector<64x64xbf16>
    %cst_11 = arith.constant dense<0.000000e+00> : vector<24x64xf32>
    %12 = tpu.matmul %10, %11, %cst_11 {dimension_numbers = #tpu.dot_dimension_numbers<[1], [0], [0], [1], [0, 0, 1, 1], [], []>} : vector<24x64xbf16>, vector<64x64xbf16>, vector<24x64xf32> -> vector<24x64xf32>
    %13 = arith.addf %8, %12 : vector<24x64xf32>
    %c0_12 = arith.constant 0 : index
    %c6 = arith.constant 6 : index
    %c0_13 = arith.constant 0 : index
    %14 = vector.load %arg1[%c0_12, %c6, %c0_13] : memref<1x42x64xbf16, #tpu.memory_space<vmem>>, vector<1x24x64xbf16>
    %15 = vector.shape_cast %14 : vector<1x24x64xbf16> to vector<24x64xbf16>
    %c192 = arith.constant 192 : index
    %c0_14 = arith.constant 0 : index
    %16 = vector.load %arg2[%c192, %c0_14] : memref<576x64xbf16, #tpu.memory_space<vmem>>, vector<64x64xbf16>
    %cst_15 = arith.constant dense<0.000000e+00> : vector<24x64xf32>
    %17 = tpu.matmul %15, %16, %cst_15 {dimension_numbers = #tpu.dot_dimension_numbers<[1], [0], [0], [1], [0, 0, 1, 1], [], []>} : vector<24x64xbf16>, vector<64x64xbf16>, vector<24x64xf32> -> vector<24x64xf32>
    %18 = arith.addf %13, %17 : vector<24x64xf32>
    %c0_16 = arith.constant 0 : index
    %c7 = arith.constant 7 : index
    %c0_17 = arith.constant 0 : index
    %19 = vector.load %arg1[%c0_16, %c7, %c0_17] : memref<1x42x64xbf16, #tpu.memory_space<vmem>>, vector<1x24x64xbf16>
    %20 = vector.shape_cast %19 : vector<1x24x64xbf16> to vector<24x64xbf16>
    %c256 = arith.constant 256 : index
    %c0_18 = arith.constant 0 : index
    %21 = vector.load %arg2[%c256, %c0_18] : memref<576x64xbf16, #tpu.memory_space<vmem>>, vector<64x64xbf16>
    %cst_19 = arith.constant dense<0.000000e+00> : vector<24x64xf32>
    %22 = tpu.matmul %20, %21, %cst_19 {dimension_numbers = #tpu.dot_dimension_numbers<[1], [0], [0], [1], [0, 0, 1, 1], [], []>} : vector<24x64xbf16>, vector<64x64xbf16>, vector<24x64xf32> -> vector<24x64xf32>
    %23 = arith.addf %18, %22 : vector<24x64xf32>
    %c0_20 = arith.constant 0 : index
    %c8 = arith.constant 8 : index
    %c0_21 = arith.constant 0 : index
    %24 = vector.load %arg1[%c0_20, %c8, %c0_21] : memref<1x42x64xbf16, #tpu.memory_space<vmem>>, vector<1x24x64xbf16>
    %25 = vector.shape_cast %24 : vector<1x24x64xbf16> to vector<24x64xbf16>
    %c320 = arith.constant 320 : index
    %c0_22 = arith.constant 0 : index
    %26 = vector.load %arg2[%c320, %c0_22] : memref<576x64xbf16, #tpu.memory_space<vmem>>, vector<64x64xbf16>
    %cst_23 = arith.constant dense<0.000000e+00> : vector<24x64xf32>
    %27 = tpu.matmul %25, %26, %cst_23 {dimension_numbers = #tpu.dot_dimension_numbers<[1], [0], [0], [1], [0, 0, 1, 1], [], []>} : vector<24x64xbf16>, vector<64x64xbf16>, vector<24x64xf32> -> vector<24x64xf32>
    %28 = arith.addf %23, %27 : vector<24x64xf32>
    %c0_24 = arith.constant 0 : index
    %c12 = arith.constant 12 : index
    %c0_25 = arith.constant 0 : index
    %29 = vector.load %arg1[%c0_24, %c12, %c0_25] : memref<1x42x64xbf16, #tpu.memory_space<vmem>>, vector<1x24x64xbf16>
    %30 = vector.shape_cast %29 : vector<1x24x64xbf16> to vector<24x64xbf16>
    %c384 = arith.constant 384 : index
    %c0_26 = arith.constant 0 : index
    %31 = vector.load %arg2[%c384, %c0_26] : memref<576x64xbf16, #tpu.memory_space<vmem>>, vector<64x64xbf16>
    %cst_27 = arith.constant dense<0.000000e+00> : vector<24x64xf32>
    %32 = tpu.matmul %30, %31, %cst_27 {dimension_numbers = #tpu.dot_dimension_numbers<[1], [0], [0], [1], [0, 0, 1, 1], [], []>} : vector<24x64xbf16>, vector<64x64xbf16>, vector<24x64xf32> -> vector<24x64xf32>
    %33 = arith.addf %28, %32 : vector<24x64xf32>
    %c0_28 = arith.constant 0 : index
    %c13 = arith.constant 13 : index
    %c0_29 = arith.constant 0 : index
    %34 = vector.load %arg1[%c0_28, %c13, %c0_29] : memref<1x42x64xbf16, #tpu.memory_space<vmem>>, vector<1x24x64xbf16>
    %35 = vector.shape_cast %34 : vector<1x24x64xbf16> to vector<24x64xbf16>
    %c448 = arith.constant 448 : index
    %c0_30 = arith.constant 0 : index
    %36 = vector.load %arg2[%c448, %c0_30] : memref<576x64xbf16, #tpu.memory_space<vmem>>, vector<64x64xbf16>
    %cst_31 = arith.constant dense<0.000000e+00> : vector<24x64xf32>
    %37 = tpu.matmul %35, %36, %cst_31 {dimension_numbers = #tpu.dot_dimension_numbers<[1], [0], [0], [1], [0, 0, 1, 1], [], []>} : vector<24x64xbf16>, vector<64x64xbf16>, vector<24x64xf32> -> vector<24x64xf32>
    %38 = arith.addf %33, %37 : vector<24x64xf32>
    %c0_32 = arith.constant 0 : index
    %c14 = arith.constant 14 : index
    %c0_33 = arith.constant 0 : index
    %39 = vector.load %arg1[%c0_32, %c14, %c0_33] : memref<1x42x64xbf16, #tpu.memory_space<vmem>>, vector<1x24x64xbf16>
    %40 = vector.shape_cast %39 : vector<1x24x64xbf16> to vector<24x64xbf16>
    %c512 = arith.constant 512 : index
    %c0_34 = arith.constant 0 : index
    %41 = vector.load %arg2[%c512, %c0_34] : memref<576x64xbf16, #tpu.memory_space<vmem>>, vector<64x64xbf16>
    %cst_35 = arith.constant dense<0.000000e+00> : vector<24x64xf32>
    %42 = tpu.matmul %40, %41, %cst_35 {dimension_numbers = #tpu.dot_dimension_numbers<[1], [0], [0], [1], [0, 0, 1, 1], [], []>} : vector<24x64xbf16>, vector<64x64xbf16>, vector<24x64xf32> -> vector<24x64xf32>
    %43 = arith.addf %38, %42 : vector<24x64xf32>
    %c0_36 = arith.constant 0 : index
    %c0_37 = arith.constant 0 : index
    %44 = vector.load %arg3[%c0_36, %c0_37] : memref<1x64xf32, #tpu.memory_space<vmem>>, vector<1x64xf32>
    %45 = vector.broadcast %44 : vector<1x64xf32> to vector<24x64xf32>
    %46 = arith.addf %43, %45 : vector<24x64xf32>
    %cst_38 = arith.constant 0.000000e+00 : f32
    %47 = vector.broadcast %cst_38 : f32 to vector<24x64xf32>
    %48 = arith.maximumf %46, %47 : vector<24x64xf32>
    %49 = arith.truncf %48 : vector<24x64xf32> to vector<24x64xbf16>
    %50 = vector.extract_strided_slice %49 {offsets = [0, 0], sizes = [4, 64], strides = [1, 1]} : vector<24x64xbf16> to vector<4x64xbf16>
    %c0_39 = arith.constant 0 : index
    %c0_40 = arith.constant 0 : index
    %c0_41 = arith.constant 0 : index
    %c0_42 = arith.constant 0 : index
    %51 = vector.load %arg4[%c0_39, %c0_40, %c0_41, %c0_42] : memref<1x4x4x64xbf16, #tpu.memory_space<vmem>>, vector<1x1x4x64xbf16>
    %52 = vector.shape_cast %51 : vector<1x1x4x64xbf16> to vector<4x64xbf16>
    %53 = vector.shape_cast %50 : vector<4x64xbf16> to vector<1x1x4x64xbf16>
    tpu.vector_store %arg4[%c0_39, %c0_40, %c0_41, %c0_42], %53 {strides = array<i32>} : memref<1x4x4x64xbf16, #tpu.memory_space<vmem>>, vector<1x1x4x64xbf16>,
    %54 = vector.extract_strided_slice %49 {offsets = [6, 0], sizes = [4, 64], strides = [1, 1]} : vector<24x64xbf16> to vector<4x64xbf16>
    %c0_43 = arith.constant 0 : index
    %c1_44 = arith.constant 1 : index
    %c0_45 = arith.constant 0 : index
    %c0_46 = arith.constant 0 : index
    %55 = vector.load %arg4[%c0_43, %c1_44, %c0_45, %c0_46] : memref<1x4x4x64xbf16, #tpu.memory_space<vmem>>, vector<1x1x4x64xbf16>
    %56 = vector.shape_cast %55 : vector<1x1x4x64xbf16> to vector<4x64xbf16>
    %57 = vector.shape_cast %54 : vector<4x64xbf16> to vector<1x1x4x64xbf16>
    tpu.vector_store %arg4[%c0_43, %c1_44, %c0_45, %c0_46], %57 {strides = array<i32>} : memref<1x4x4x64xbf16, #tpu.memory_space<vmem>>, vector<1x1x4x64xbf16>,
    %58 = vector.extract_strided_slice %49 {offsets = [12, 0], sizes = [4, 64], strides = [1, 1]} : vector<24x64xbf16> to vector<4x64xbf16>
    %c0_47 = arith.constant 0 : index
    %c2_48 = arith.constant 2 : index
    %c0_49 = arith.constant 0 : index
    %c0_50 = arith.constant 0 : index
    %59 = vector.load %arg4[%c0_47, %c2_48, %c0_49, %c0_50] : memref<1x4x4x64xbf16, #tpu.memory_space<vmem>>, vector<1x1x4x64xbf16>
    %60 = vector.shape_cast %59 : vector<1x1x4x64xbf16> to vector<4x64xbf16>
    %61 = vector.shape_cast %58 : vector<4x64xbf16> to vector<1x1x4x64xbf16>
    tpu.vector_store %arg4[%c0_47, %c2_48, %c0_49, %c0_50], %61 {strides = array<i32>} : memref<1x4x4x64xbf16, #tpu.memory_space<vmem>>, vector<1x1x4x64xbf16>,
    %62 = vector.extract_strided_slice %49 {offsets = [18, 0], sizes = [4, 64], strides = [1, 1]} : vector<24x64xbf16> to vector<4x64xbf16>
    %c0_51 = arith.constant 0 : index
    %c3 = arith.constant 3 : index
    %c0_52 = arith.constant 0 : index
    %c0_53 = arith.constant 0 : index
    %63 = vector.load %arg4[%c0_51, %c3, %c0_52, %c0_53] : memref<1x4x4x64xbf16, #tpu.memory_space<vmem>>, vector<1x1x4x64xbf16>
    %64 = vector.shape_cast %63 : vector<1x1x4x64xbf16> to vector<4x64xbf16>
    %65 = vector.shape_cast %62 : vector<4x64xbf16> to vector<1x1x4x64xbf16>
    tpu.vector_store %arg4[%c0_51, %c3, %c0_52, %c0_53], %65 {strides = array<i32>} : memref<1x4x4x64xbf16, #tpu.memory_space<vmem>>, vector<1x1x4x64xbf16>,
    return
  }
  func.func @transform_0(%arg0: i32) -> (i32, i32, i32) {
    %c0_i32 = arith.constant 0 : i32
    %c0_i32_0 = arith.constant 0 : i32
    %c0_i32_1 = arith.constant 0 : i32
    return %arg0, %c0_i32, %c0_i32_0 : i32, i32, i32
  }
  func.func @transform_1(%arg0: i32) -> (i32, i32) {
    %c0_i32 = arith.constant 0 : i32
    %c0_i32_0 = arith.constant 0 : i32
    %c0_i32_1 = arith.constant 0 : i32
    return %c0_i32, %c0_i32_0 : i32, i32
  }
  func.func @transform_2(%arg0: i32) -> (i32, i32) {
    %c0_i32 = arith.constant 0 : i32
    %c0_i32_0 = arith.constant 0 : i32
    %c0_i32_1 = arith.constant 0 : i32
    return %c0_i32, %c0_i32_0 : i32, i32
  }
  func.func @transform_3(%arg0: i32) -> (i32, i32, i32, i32) {
    %c0_i32 = arith.constant 0 : i32
    %c0_i32_0 = arith.constant 0 : i32
    %c0_i32_1 = arith.constant 0 : i32
    %c0_i32_2 = arith.constant 0 : i32
    return %arg0, %c0_i32, %c0_i32_0, %c0_i32_1 : i32, i32, i32, i32
  }
}

</mosaic_0001>

<bundles_post_ra>
// kernel: tpu_custom_call.1
= control target key start
LH: loop header
LB: loop body
LE: loop exit
PB: predicated region body
PF: predicated region fallthrough
CT: control target
= control target key end

     0   :  { %8 = vsyncpa [#allocation3], 0  ;;  %s1616_s0 = inlined_call_operand.vmem [shape: bf16[2,42,64], index: 0, kind: input, shape index: {}]   ;;  %s1617_s1 = inlined_call_operand.vmem [shape: bf16[576,64], index: 1, kind: input, shape index: {}]   ;;  %s1618_s2 = inlined_call_operand.vmem [shape: f32[1,64], index: 2, kind: input, shape index: {}]   ;;  %s1619_s3 = inlined_call_operand.hbm [shape: bf16[2,4,4,64], index: 3, kind: output, shape index: {}]  }
   0x1   :  { %10 = vsyncpa [#allocation3 + $0x1], 0  ;;  %s1316_s12 = smov 0   ;;  %s1318_s13 = smov 0  }
   0x2   :  { %s1320_s14 = smov 0   ;;  %s1322_s15 = smov 0  }
   0x3 LB: > { %s1337_s16 = sadd.s32 4294967295, %s1292_s15   ;;  %s958_s17 = sadd.s32 4294967294, %s1292_s15   ;;  %s1292_s15 = sphi %s1322_s15, %s1627_s15   ;;  %s1288_s14 = sphi %s1320_s14, %s1626_s14   ;;  %s1284_s13 = sphi %s1318_s13, %s1625_s13   ;;  %s1280_s12 = sphi %s1316_s12, %s1624_s12  }
   0x4   : > { %s1341_s18 = sadd.s32 1, %s1292_s15   ;;  %s91_s19 = sadd.s32 1, %s1288_s14 }
   0x5   : > { %s88_s20 = ssub.s32 %s1292_s15, %s1341_s18  ;;  %p101_p0 = scmp.ne.s32.totalorder %s1288_s14, %s1284_s13 }
   0x6   : > { %p89_p1 = scmp.eq.s32.totalorder %s88_s20, 0  ;;  %p102_p2 = scmp.eq.s32.totalorder %s1337_s16, 1 }
   0x7   : > { %p107_p3 = scmp.ne.s32.totalorder %s1284_s13, %s1280_s12  ;;  %p108_p4 = scmp.eq.s32.totalorder %s958_s17, 1 }
   0x8   : > { %s1352_s21 = scalar_select %p89_p1, %s1288_s14, %s91_s19  }
   0x9   : > { %p1354_p5 = por %p102_p2, %p101_p0  ;;  %p1358_p6 = por %p108_p4, %p107_p3 }
   0xa   : > { %p961_p7 = scmp.ge.s32.totalorder %s1292_s15, 1  ;;  %p140_p8 = scmp.lt.s32.totalorder %s1292_s15, 3 }
   0xc   : > { %p141_p9 = pnand %p961_p7, %p140_p8 }
   0xd   : > { %p164_p10 = scmp.lt.s32.totalorder (!%p141_p9), %s1337_s16, 1  ;;  %s161_s6 = sand.u32 (!%p141_p9), 1, %s1284_s13  }
   0xe   : > { %144 = sbr.rel (%p141_p9) target bundleno = 251 (0xfb), region = 32  ;;  %s962_s7 = sshll.u32 (!%p141_p9), %s161_s6, 3 }
   0xf   : > { %s1564_s8 = scalar_lea.vmem (!%p141_p9), [#allocation2], %s962_s7  ;;  %s1173_s9 = sshll.u32 (!%p141_p9), %s1337_s16, 3 }
  0x10   : > { %s892_s17 = scalar_lea.hbm (!%p141_p9), %s1619_s3, %s1173_s9  ;;  %s893_s19 = sshll.u32 (!%p141_p9), %s1564_s8, 4  ;;  %s894_s19 = int_to_ptr.vmem [resolvable:$true] %s893_s19 }
  0x11   : > { %s881_s20 = scalar_lea.sflag (!%p141_p9), [#allocation3], %s161_s6  ;;  %s1250_s29 = scalar_lea.hbm (!%p141_p9), %s1619_s3, 16 }
  0x13   : > { %v1144_v0 = vld [vmem:[%s1617_s1 + $0x38] sm:$0xff]  ;;  %v1143_v3 = vld [vmem:[%s1617_s1 + $0x30] sm:$0xff]  ;;  %s165_s5 = scalar_select %p164_p10, %s1337_s16, 1  ;;  %v1142_v6 = vld [vmem:[%s1617_s1 + $0x28] sm:$0xff]  ;;  %vm325_vm0 = vcmask 1046528   ;;  %vm240_vm2 = vcmask 523264  }
  0x14   : > { %v1148_v1 = vld [vmem:[%s1617_s1 + $0x58] sm:$0xff]  ;;  %251 = vmatpush.bf16.msra.mxu0 %v1144_v0  ;;  %1183 = vmatpush.bf16.msra.mxu1 %v1144_v0  ;;  %v1147_v4 = vld [vmem:[%s1617_s1 + $0x50] sm:$0xff]  ;;  %v1146_v7 = vld [vmem:[%s1617_s1 + $0x48] sm:$0xff]  ;;  %vm200_vm1 = vsmask.f32 7424  ;;  %vm396_vm3 = vcmask 1044480  }
  0x15   : > { %v1152_v2 = vld [vmem:[%s1617_s1 + $0x78] sm:$0xff]  ;;  %363 = vmatpush.bf16.msra.mxu2 %v1148_v1  ;;  %v1151_v5 = vld [vmem:[%s1617_s1 + $0x70] sm:$0xff]  ;;  %s1187_s10 = smul.u32 24, %s165_s5  ;;  %v1150_v8 = vld [vmem:[%s1617_s1 + $0x68] sm:$0xff]  ;;  %vm463_vm4 = vsmask.f32 4352 }
  0x16   : > { %434 = vmatpush.bf16.msra.mxu3 %v1152_v2  ;;  %v1141_v22 = vld [vmem:[%s1617_s1 + $0x20] sm:$0xff]  ;;  %v1140_v27 = vld [vmem:[%s1617_s1 + $0x18] sm:$0xff]  ;;  %v1139_v42 = vld [vmem:[%s1617_s1 + $0x10] sm:$0xff]  ;;  %vm615_vm5 = vcmask 1045504   ;;  %vm682_vm6 = vsmask.f32 5376 }
  0x17   : > { %s1396_s28 = scalar_lea.vmem %s1616_s0, %s1187_s10  ;;  %v1145_v28 = vld [vmem:[%s1617_s1 + $0x40] sm:$0xff]  ;;  %v1156_v34 = vld [vmem:[%s1617_s1 + $0x98] sm:$0xff]  ;;  %v1155_v47 = vld [vmem:[%s1617_s1 + $0x90] sm:$0xff]  ;;  %vm830_vm7 = vcmask 517120   ;;  %vm842_vm8 = vcmask 1040384   ;;  %vm843_vm9 = vcmask 1042434  }
  0x18   : > { %252 = vmatpush.bf16.msra.mxu0 %v1143_v3  ;;  %1184 = vmatpush.bf16.msra.mxu1 %v1143_v3  ;;  %v1399_v9 = vld [vmem:[%s1396_s28] sm:$0xff]   ;;  %v1402_v10 = vld [vmem:[%s1396_s28 + $0x8] sm:$0xff]   ;;  %v1164_v40 = vld [vmem:[%s1617_s1 + $0xd8] sm:$0xff]  ;;  %vm845_vm11 = vcmask 1044484   ;;  %vm847_vm13 = vcmask 1046534   ;;  %vm864_vm15 = vcmask 1041408  }
  0x19   : > { %364 = vmatpush.bf16.msra.mxu2 %v1147_v4  ;;  %v181_v11 = vld [vmem:[%s1396_s28 + $0xc] sm:$0x1]  ;;  %v1406_v12 = vunpack.c.l.b16 %v1402_v10  ;;  %v202_v14 = vshrl.u32 %v1399_v9, 16  ;;  %v204_v15 = vshll.u32 %v1399_v9, 16  ;;  %v313_v16 = vld [vmem:[%s1396_s28] sm:$0xe]  ;;  %v1413_v18 = vunpack.c.h.b16 %v1399_v9  ;;  %vm844_vm10 = vmor %vm842_vm8, %vm843_vm9 }
  0x1a   : > { %435 = vmatpush.bf16.msra.mxu3 %v1151_v5  ;;  %v197_v13 = vunpack.c.l.b16 %v181_v11  ;;  %v380_v17 = vld [vmem:[%s1396_s28] sm:$0x8]  ;;  %v323_v19 = vunpack.c.l.b16 %v313_v16  ;;  %v381_v20 = vld [vmem:[%s1396_s28 + $0xc] sm:$0x7]  ;;  %v461_v26 = vunpack.c.h.b16 %v1402_v10  ;;  %v1168_v48 = vld [vmem:[%s1617_s1 + $0xf8] sm:$0xff]  ;;  %v473_v53 = vshrl.u32 %v1402_v10, 16 }
  0x1b   : > { %v392_v21 = vunpack.c.l.b16 %v380_v17  ;;  %v206_v24 = vrot.slane %v204_v15, 1  ;;  %v393_v25 = vunpack.c.l.b16 %v381_v20  ;;  %v1149_v35 = vld [vmem:[%s1617_s1 + $0x60] sm:$0xff]  ;;  %v1163_v50 = vld [vmem:[%s1617_s1 + $0xd0] sm:$0xff]  ;;  %v476_v54 = vshll.u32 %v1402_v10, 16  ;;  %v1138_v55 = vld [vmem:[%s1617_s1 + $0x8] sm:$0xff]  ;;  %s895_s16 = sshll.u32 %s892_s17, 4  ;;  %s896_s16 = int_to_ptr.hbm [resolvable:$true] %s895_s16 }
  0x1c   : > { %253 = vmatpush.bf16.msra.mxu0 %v1142_v6  ;;  %1185 = vmatpush.bf16.msra.mxu1 %v1142_v6  ;;  %v1420_v23 = vpack.c.b16 %v197_v13, %v1406_v12  ;;  %v324_v29 = vpack.c.b16 %v1413_v18, %v323_v19  ;;  %v1154_v56 = vld [vmem:[%s1617_s1 + $0x88] sm:$0xff]  ;;  %v1167_v57 = vld [vmem:[%s1617_s1 + $0xf0] sm:$0xff]  ;;  %v475_v61 = vrot.slane %v473_v53, 3  ;;  %v1137_v63 = vld [vmem:[%s1617_s1] sm:$0xff]  ;;  %v541_v53 = vpack.c.b16 %v461_v26, %v461_v26  ;;  %s1244_s24 = sshra.s32 %s896_s16, 4  ;;  %s1245_s24 = int_to_ptr.hbm [resolvable:$true] %s1244_s24 }
  0x1d   : > { %365 = vmatpush.bf16.msra.mxu2 %v1146_v7  ;;  %v394_v30 = vpack.c.b16 %v1413_v18, %v392_v21  ;;  %v207_v31 = vor.u32 %v206_v24, %v202_v14  ;;  %v1441_v38 = vpack.c.b16 %v393_v25, %v1406_v12  ;;  %v1162_v58 = vld [vmem:[%s1617_s1 + $0xc8] sm:$0xff]  ;;  %v478_v62 = vrot.slane %v476_v54, 4  ;;  %v1153_v0 = vld [vmem:[%s1617_s1 + $0x80] sm:$0xff]  ;;  %v1160_v1 = vld [vmem:[%s1617_s1 + $0xb8] sm:$0xff]  ;;  %s1246_s25 = scalar_lea.hbm %s1245_s24, 8  ;;  %p1251_p0 = scmp.lt.s32.totalorder %s1245_s24, %s1619_s3 }
  0x1e   : > { %436 = vmatpush.bf16.msra.mxu3 %v1150_v8  ;;  %v209_v32 = vshll.u32 %v1420_v23, 16  ;;  %v213_v33 = vshrl.u32 %v1420_v23, 16  ;;  %v327_v36 = vrot.slane %v1420_v23, 1  ;;  %v326_v37 = vrot.slane %v324_v29, 1  ;;  %v1172_v2 = vld [vmem:[%s1617_s1 + $0x118] sm:$0xff]  ;;  %v1166_v3 = vld [vmem:[%s1617_s1 + $0xe8] sm:$0xff]  ;;  %vm846_vm12 = vmor %vm844_vm10, %vm845_vm11  ;;  %p1247_p11 = scmp.ne.s32.totalorder %s1245_s24, %s1246_s25  ;;  %p1252_p1 = scmp.lt.s32.totalorder %s1250_s29, %s1246_s25 }
  0x1f   : > { %v397_v39 = vrot.slane %v394_v30, 3  ;;  %v398_v44 = vrot.slane %v1441_v38, 3  ;;  %v465_v51 = vshrl.u32 %v394_v30, 16  ;;  %v468_v52 = vshll.u32 %v394_v30, 16  ;;  %v593_v4 = vld [vmem:[%s1396_s28 + $0x4] sm:$0xc]  ;;  %vm1572_vm14 = vmor %vm846_vm12, %vm847_vm13 }
  0x20   : > { %254 = vmatpush.bf16.msra.mxu0 %v1141_v22  ;;  %1186 = vmatpush.bf16.msra.mxu1 %v1141_v22  ;;  %v211_v41 = vrot.slane %v209_v32, 1  ;;  %v328_v43 = vsel %vm325_vm0, %v326_v37, %v327_v36  ;;  %v1500_v5 = vld [vmem:[%s1396_s28 + $0x8] sm:$0xff]   ;;  %v670_v6 = vld [vmem:[%s1396_s28 + $0x10] sm:$0x7]  ;;  %v479_v8 = vor.u32 %v478_v62, %v475_v61  ;;  %v1161_v11 = vld [vmem:[%s1617_s1 + $0xc0] sm:$0xff]  ;;  %v609_v16 = vunpack.c.l.b16 %v593_v4  ;;  %p1248_p12 = pnand %p1247_p11, %p1354_p5  ;;  %p1253_p2 = por %p1252_p1, %p1251_p0 }
  0x21   : > { %366 = vmatpush.bf16.msra.mxu2 %v1145_v28  ;;  %v399_v49 = vsel %vm396_vm3, %v397_v39, %v398_v44  ;;  %v467_v59 = vrot.slane %v465_v51, 3  ;;  %v470_v60 = vrot.slane %v468_v52, 4  ;;  %v1159_v13 = vld [vmem:[%s1617_s1 + $0xb0] sm:$0xff]  ;;  %v1180_v14 = vunpack.c.l.b16 %v1500_v5  ;;  %v1165_v19 = vld [vmem:[%s1617_s1 + $0xe0] sm:$0xff]  ;;  %v1158_v22 = vld [vmem:[%s1617_s1 + $0xa8] sm:$0xff] }
  0x22   : > { %v212_v45 = vsel %vm200_vm1, %v207_v31, %v211_v41  ;;  %v215_v46 = vor.u32 %v213_v33, %v211_v41  ;;  %437 = vmatpush.bf16.msra.mxu3 %v1149_v35  ;;  %v1181_v15 = vunpack.c.h.b16 %v1500_v5  ;;  %v680_v17 = vunpack.c.l.b16 %v670_v6  ;;  %v1171_v21 = vld [vmem:[%s1617_s1 + $0x110] sm:$0xff]  ;;  %v1170_v29 = vld [vmem:[%s1617_s1 + $0x108] sm:$0xff]  ;;  %p1249_p13 = pneg %p1248_p12 }
  0x23   : > { %980 = vmatmul.msk.bf16.vlgmr.msra.gmra.mxu0 %vm240_vm2, %v212_v45  ;;  %v471_v7 = vor.u32 %v470_v60, %v467_v59  ;;  %v596_v24 = vld [vmem:[%s1396_s28 + $0x10] sm:$0x3]  ;;  %v613_v25 = vpack.c.b16 %v1180_v14, %v609_v16  ;;  %v751_v45 = vld [vmem:[%s1396_s28 + $0x4] sm:$0x8]  ;;  %v540_v51 = vpack.c.b16 %v1406_v12, %v1413_v18  ;;  %vm869_vm0 = vcmask 1043458  }
  0x24   : > { %299 = vmatpush.bf16.msrb.mxu1 %v1140_v27  ;;  %515 = vmatpush.bf16.msrb.mxu0 %v1156_v34  ;;  %v681_v27 = vpack.c.b16 %v680_v17, %v1181_v15  ;;  %v612_v28 = vunpack.c.l.b16 %v596_v24  ;;  %v1169_v34 = vld [vmem:[%s1617_s1 + $0x100] sm:$0xff]  ;;  %p1254_p3 = pnand %p1253_p2, %p1249_p13 }
  0x25   : > { %653 = vmatpush.bf16.msrb.mxu2 %v1164_v40  ;;  %981 = vmatmul.msk.bf16.vlgmr.msra.gmra.mxu1 %vm240_vm2, %v215_v46  ;;  %v480_v20 = vsel %vm463_vm4, %v471_v7, %v479_v8  ;;  %v684_v30 = vshrl.u32 %v613_v25, 16  ;;  %v687_v31 = vshll.u32 %v613_v25, 16  ;;  %v616_v39 = vrot.slane %v613_v25, 2 }
  0x26   : > { %1016 = vmatmul.msk.bf16.vlgmr.msra.gmra.mxu2 %vm240_vm2, %v328_v43  ;;  %1034 = vmatmul.msk.bf16.vlgmr.msra.gmra.mxu3 %vm240_vm2, %v399_v49  ;;  %v692_v32 = vshrl.u32 %v681_v27, 16  ;;  %v695_v33 = vshll.u32 %v681_v27, 16  ;;  %v614_v23 = vpack.c.b16 %v612_v28, %v1181_v15  ;;  %v265_v43 = vpack.c.b16 %v1406_v12, %v1406_v12 }
  0x27   : > { %734 = vmatpush.bf16.msrb.mxu3 %v1168_v48  ;;  %v686_v35 = vrot.slane %v684_v30, 2 }
  0x28   : > { %300 = vmatpush.bf16.msrb.mxu1 %v1139_v42  ;;  %516 = vmatpush.bf16.msrb.mxu0 %v1155_v47  ;;  %v694_v37 = vrot.slane %v692_v32, 2  ;;  %v697_v38 = vrot.slane %v695_v33, 3  ;;  %v617_v40 = vrot.slane %v614_v23, 2  ;;  %v761_v47 = vunpack.c.l.b16 %v751_v45 }
  0x29   : > { %654 = vmatpush.bf16.msrb.mxu2 %v1163_v50  ;;  %v764_v50 = vrot.slane %v681_v27, 3 }
  0x2a   : > { %v698_v42 = vor.u32 %v697_v38, %v694_v37  ;;  %v762_v48 = vpack.c.b16 %v1180_v14, %v761_v47 }
  0x2b   : > { %735 = vmatpush.bf16.msrb.mxu3 %v1167_v57 }
  0x2c   : > { %301 = vmatpush.bf16.msrb.mxu1 %v1138_v55  ;;  %517 = vmatpush.bf16.msrb.mxu0 %v1154_v56  ;;  %v763_v49 = vrot.slane %v762_v48, 3 }
  0x2d   : > { %655 = vmatpush.bf16.msrb.mxu2 %v1162_v58 }
  0x2e   : > { %v765_v52 = vsel %vm396_vm3, %v763_v49, %v764_v50 }
  0x2f   : > { %736 = vmatpush.bf16.msrb.mxu3 %v1166_v3 }
  0x30   : > { %302 = vmatpush.bf16.msrb.mxu1 %v1137_v63  ;;  %518 = vmatpush.bf16.msrb.mxu0 %v1153_v0 }
  0x31   : > { %656 = vmatpush.bf16.msrb.mxu2 %v1161_v11 }
  0x33   : > { %1052 = vmatmul.msk.bf16.vlgmr.msrb.gmra.mxu0 %vm240_vm2, %v480_v20  ;;  %737 = vmatpush.bf16.msrb.mxu3 %v1165_v19 }
  0x34   : > { %576 = vmatpush.bf16.msra.mxu1 %v1160_v1  ;;  %800 = vmatpush.bf16.msra.mxu0 %v1172_v2 }
  0x35   : > { %998 = vmatmul.msk.bf16.vlgmr.msrb.gmra.mxu1 %vm240_vm2, %v1399_v9  ;;  %v1157_v9 = vld [vmem:[%s1617_s1 + $0xa0] sm:$0xff] }
  0x36   : > { %1017 = vmatmul.msk.bf16.gmra.mxu2 %vm240_vm2, %v327_v36  ;;  %1035 = vmatmul.msk.bf16.gmra.mxu3 %vm240_vm2, %v398_v44  ;;  %v689_v36 = vrot.slane %v687_v31, 3  ;;  %v618_v44 = vsel %vm615_vm5, %v616_v39, %v617_v40 }
  0x38   : > { %577 = vmatpush.bf16.msra.mxu1 %v1159_v13  ;;  %801 = vmatpush.bf16.msra.mxu0 %v1171_v21  ;;  %v690_v41 = vor.u32 %v689_v36, %v686_v35 }
  0x3a   : > { %v699_v46 = vsel %vm682_vm6, %v690_v41, %v698_v42 }
  0x3c   : > { %578 = vmatpush.bf16.msra.mxu1 %v1158_v22  ;;  %802 = vmatpush.bf16.msra.mxu0 %v1170_v29  ;;  %v1229_v29 = vld [vmem:[%s1618_s2] ss:$0 sm:$0xff] }
  0x40   : > { %579 = vmatpush.bf16.msra.mxu1 %v1157_v9  ;;  %803 = vmatpush.bf16.msra.mxu0 %v1169_v34 }
  0x43   : > { %1053 = vmatmul.msk.bf16.gmra.mxu0 %vm240_vm2, %v479_v8 }
  0x45   : > { %999 = vmatmul.msk.bf16.gmra.mxu1 %vm240_vm2, %v265_v43 }
  0x46   : > { %1088 = vmatmul.msk.bf16.vlgmr.msrb.gmra.mxu2 %vm240_vm2, %v618_v44  ;;  %1106 = vmatmul.msk.bf16.vlgmr.msrb.gmra.mxu3 %vm240_vm2, %v699_v46 }
  0x53   : > { %1124 = vmatmul.msk.bf16.vlgmr.msra.gmra.mxu0 %vm240_vm2, %v765_v52 }
  0x55   : > { %1070 = vmatmul.msk.bf16.vlgmr.msra.gmra.mxu1 %vm240_vm2, %v540_v51 }
  0x56   : > { %1089 = vmatmul.msk.bf16.gmra.mxu2 %vm240_vm2, %v617_v40  ;;  %1107 = vmatmul.msk.bf16.gmra.mxu3 %vm240_vm2, %v698_v42 }
  0x63   : > { %1125 = vmatmul.msk.bf16.gmra.mxu0 %vm240_vm2, %v764_v50 }
  0x65   : > { %1071 = vmatmul.msk.bf16.gmra.mxu1 %vm240_vm2, %v541_v53 }
  0xa0   : > { %v256_v54 = vpop.f32.mrf.mxu0 }
  0xa2   : > { %v261_v12 = vpop.f32.mrf.mxu1 }
  0xa8   : > { %v258_v55 = vpop.f32.mrf.mxu0 }
  0xa9   : > { %v368_v18 = vpop.f32.mrf.mxu2  ;;  %v439_v56 = vpop.f32.mrf.mxu3 }
  0xaa   : > { %v263_v57 = vpop.f32.mrf.mxu1 }
  0xb0   : > { %v520_v59 = vpop.f32.mrf.mxu0 }
  0xb1   : > { %v370_v58 = vpop.f32.mrf.mxu2  ;;  %v441_v60 = vpop.f32.mrf.mxu3 }
  0xb2   : > { %v304_v61 = vpop.f32.mrf.mxu1 }
  0xb3   : > { %v305_v4 = vadd.f32 %v304_v61, %v256_v54 }
  0xb5   : > { %v377_v6 = vadd.f32 %v368_v18, %v305_v4 }
  0xb7   : > { %v448_v13 = vadd.f32 %v439_v56, %v377_v6 }
  0xb8   : > { %v522_v63 = vpop.f32.mrf.mxu0 }
  0xb9   : > { %v373_v62 = vpop.f32.mrf.mxu2  ;;  %v444_v0 = vpop.f32.mrf.mxu3  ;;  %v529_v16 = vadd.f32 %v520_v59, %v448_v13 }
  0xba   : > { %v306_v10 = vpop.f32.mrf.mxu1 }
  0xbb   : > { %v307_v14 = vadd.f32 %v306_v10, %v258_v55 }
  0xbd   : > { %v378_v17 = vadd.f32 %v370_v58, %v307_v14 }
  0xbf   : > { %v449_v24 = vadd.f32 %v441_v60, %v378_v17 }
  0xc0   : > { %v525_v26 = vpop.f32.mrf.mxu0 }
  0xc1   : > { %v375_v1 = vpop.f32.mrf.mxu2  ;;  %v446_v2 = vpop.f32.mrf.mxu3  ;;  %v530_v31 = vadd.f32 %v522_v63, %v449_v24 }
  0xc2   : > { %v309_v3 = vpop.f32.mrf.mxu1 }
  0xc3   : > { %v310_v25 = vadd.f32 %v309_v3, %v261_v12 }
  0xc5   : > { %v379_v32 = vadd.f32 %v373_v62, %v310_v25 }
  0xc7   : > { %v450_v37 = vadd.f32 %v444_v0, %v379_v32 }
  0xc8   : > { %v527_v7 = vpop.f32.mrf.mxu0 }
  0xc9   : > { %v658_v5 = vpop.f32.mrf.mxu2  ;;  %v739_v8 = vpop.f32.mrf.mxu3  ;;  %v531_v43 = vadd.f32 %v525_v26, %v450_v37 }
  0xca   : > { %v311_v11 = vpop.f32.mrf.mxu1 }
  0xd0   : > { %v805_v19 = vpop.f32.mrf.mxu0 }
  0xd1   : > { %v660_v15 = vpop.f32.mrf.mxu2  ;;  %v741_v20 = vpop.f32.mrf.mxu3 }
  0xd2   : > { %v581_v21 = vpop.f32.mrf.mxu1 }
  0xd3   : > { %v590_v22 = vadd.f32 %v581_v21, %v529_v16 }
  0xd5   : > { %v667_v27 = vadd.f32 %v658_v5, %v590_v22 }
  0xd7   : > { %v748_v28 = vadd.f32 %v739_v8, %v667_v27 }
  0xd8   : > { %v807_v9 = vpop.f32.mrf.mxu0 }
  0xd9   : > { %v663_v30 = vpop.f32.mrf.mxu2  ;;  %v814_v33 = vadd.f32 %v805_v19, %v748_v28  ;;  %v744_v23 = vpop.f32.mrf.mxu3 }
  0xda   : > { %v583_v34 = vpop.f32.mrf.mxu1 }
  0xdb   : > { %v821_v35 = vadd.f32 %v1229_v29, %v814_v33  ;;  %v591_v36 = vadd.f32 %v583_v34, %v530_v31 }
  0xdd   : > { %v824_v38 = vmax.f32 %v821_v35, 0.0  ;;  %v668_v39 = vadd.f32 %v660_v15, %v591_v36 }
  0xdf   : > { %v827_v40 = vpack.c.bf16 %v824_v38, %v824_v38  ;;  %v749_v41 = vadd.f32 %v741_v20, %v668_v39 }
  0xe0   : > { %v810_v45 = vpop.f32.mrf.mxu0 }
  0xe1   : > { %v665_v42 = vpop.f32.mrf.mxu2  ;;  %831 = vst.msk [vmem:[%s1564_s8] sm:$0x3] %vm830_vm7, %v827_v40  ;;  %v815_v44 = vadd.f32 %v807_v9, %v749_v41  ;;  %v746_v46 = vpop.f32.mrf.mxu3 }
  0xe2   : > { %833 = vst.sshfl [vmem:[#allocation1] sm:$0xff pattern:$0x75643120] %v827_v40  ;;  %v586_v47 = vpop.f32.mrf.mxu1 }
  0xe3   : > { %v822_v48 = vadd.f32 %v1229_v29, %v815_v44  ;;  %v592_v49 = vadd.f32 %v586_v47, %v531_v43 }
  0xe5   : > { %v825_v50 = vmax.f32 %v822_v48, 0.0  ;;  %v669_v51 = vadd.f32 %v663_v30, %v592_v49 }
  0xe7   : > { %v828_v52 = vpack.c.bf16 %v825_v50, %v825_v50  ;;  %v750_v53 = vadd.f32 %v744_v23, %v669_v51 }
  0xe8   : > { %v812_v18 = vpop.f32.mrf.mxu0 }
  0xe9   : > { %835 = vst.sshfl [vmem:[#allocation1 + $0x10] sm:$0xff pattern:$0x75643120] %v828_v52  ;;  %v837_v54 = vld [vmem:[#allocation1 + $0x1] ss:$2 sm:$0xff]  ;;  %v816_v12 = vadd.f32 %v810_v45, %v750_v53 }
  0xea   : > { %856 = vst.sshfl [vmem:[#allocation1] sm:$0xff pattern:$0x75643120] %v828_v52  ;;  %v588_v55 = vpop.f32.mrf.mxu1  ;;  %v1126_v61 = vrot.slane %v837_v54, 9 }
  0xeb   : > { %v823_v56 = vadd.f32 %v1229_v29, %v816_v12 }
  0xed   : > { %v826_v57 = vmax.f32 %v823_v56, 0.0 }
  0xef   : > { %v829_v58 = vpack.c.bf16 %v826_v57, %v826_v57 }
  0xf0   : > { %v840_v59 = vld [vmem:[#allocation1 + $0x10] ss:$2 sm:$0xff] }
  0xf1   : > { %v851_v62 = vrot.slane %v840_v59, 7  ;;  %v863_v63 = vrot.slane %v829_v58, 2  ;;  %v858_v0 = vld [vmem:[#allocation1 + $0x1] ss:$2 sm:$0xff] }
  0xf2   : > { %1128 = vst.msk [vmem:[%s1564_s8 + $0x4] sm:$0x3] %vm830_vm7, %v858_v0 }
  0xf3   : > { %v852_v10 = vsel %vm1572_vm14, %v1126_v61, %v851_v62  ;;  %v867_v1 = vsel %vm864_vm15, %v829_v58, %v863_v63  ;;  %v870_v26 = vsel %vm869_vm0, %v829_v58, %v863_v63 }
  0xf4   : > { %1127 = vst.msk [vmem:[%s1564_s8 + $0x2] sm:$0x3] %vm830_vm7, %v852_v10  ;;  %v1129_v2 = vrot.slane %v867_v1, 9  ;;  %v1130_v3 = vrot.slane %v870_v26, 9 }
  0xf6   : > { %v876_v4 = vsel %vm1572_vm14, %v1129_v2, %v1130_v3 }
  0xf7   : > { %1131 = vst.msk [vmem:[%s1564_s8 + $0x6] sm:$0x3] %vm830_vm7, %v876_v4 }
  0xf8   : > { %1257 = shalt.err (!%p1254_p3)
}
  0xf9   : > { %s1294_s28 = smov 32   ;;  %s1295_s5 = smov 2  }
  0xfa   : > { %1188 = dma.vmem_to_hbm [thread:$0]  (%p1354_p5), %s894_s19, 128, %s896_s16, %s881_s20, %s1294_s28, %s1294_s28, %s1295_s5  }
  0xfb PF: > { %p1194_p4 = scmp.ge.s32.totalorder %s1292_s15, 2  ;;  %s910_s6 = sand.u32 1, %s1280_s12  }
  0xfc   : > { %s911_s7 = scalar_lea.sflag [#allocation3], %s910_s6 }
  0xfd   : > { %p1191_p7 = pnand %p1194_p4, %p1358_p6 }
  0xff   : > { %p1192_p8 = pneg %p1191_p7 }
 0x101   : > { %1275 = dma.done.wait (%p1192_p8), %s911_s7, 128  }
 0x102   : > { %1277 = vsyncadd (%p1192_p8), %s911_s7, 4294967168  ;;  %p13_p9 = scmp.ge.s32.totalorder %s1341_s18, 4   ;;  %s1624_s12 = smov %s1284_s13 }
 0x103   : > { %s1625_s13 = smov %s1288_s14  ;;  %s1626_s14 = smov %s1352_s21 }
 0x104   : > { %s1627_s15 = smov %s1341_s18  ;;  %15 = sbr.rel (!%p13_p9) target bundleno = 3 (0x3), region = 73 }
 0x109   :  { %917 = vsyncpa [#allocation3], 1 }
 0x10a   :  { %919 = vsyncpa [#allocation3 + $0x1], 1 }

</bundles_post_ra>
